<compile_context>
chip_gen: v7x
topology: tpu7x:2x2x1
jax: 0.10.0
libtpu: 0.0.40
codegen_flags: <defaults>
</compile_context>

<pallas_src>
import jax
import jax.numpy as jnp
from jax.experimental import pallas as pl
from jax.experimental.pallas import tpu as pltpu

EPS = 1e-10


def _cdiv(a: int, b: int) -> int:
    return -(-a // b)


def _round_up(x: int, m: int) -> int:
    return ((x + m - 1) // m) * m


def _chip_config() -> dict:
    """Trace-time chip dispatch for block sizing (defensive: falls back to v6e)."""
    kind = ""
    try:
        kind = jax.devices()[0].device_kind.lower()
    except Exception:
        pass
    if "v7" in kind:
        # ~3.2 TB/s HBM per TC -> bigger blocks pay; only 64 MiB physical VMEM.
        return dict(target=4 << 20, default_scoped=32 << 20, cap=48 << 20, two_tc=True)
    if "v5e" in kind or "v5 lite" in kind or "v5lite" in kind:
        # 16 MiB default scoped VMEM; ~820 GB/s HBM saturates at ~2 MiB blocks.
        return dict(target=2 << 20, default_scoped=16 << 20, cap=32 << 20, two_tc=False)
    # v6e (and unknown): 2 MiB blocks already measured at ~85% of HBM roofline.
    return dict(target=2 << 20, default_scoped=32 << 20, cap=64 << 20, two_tc=False)


def _pick_tiles(n: int, c: int, hw: int, itemsize: int,
                target_bytes: int, want_two_steps: bool) -> tuple[int, int]:
    """Pick (BN, TILE_HW) so one x block is ~target_bytes and tails are balanced."""
    slab_bytes = c * hw * itemsize                    # one image's worth of x
    if slab_bytes >= target_bytes or n == 1:
        # Tile along HW only, with near-equal step sizes (balanced ragged tail).
        bn = 1
        target_lanes = max(128, target_bytes // max(1, c * itemsize))
        if hw <= target_lanes:
            tile_hw = hw                              # full lane extent: legal block
        else:
            nblk = _cdiv(hw, target_lanes)
            tile_hw = min(hw, _round_up(_cdiv(hw, nblk), 128))
    else:
        # Small per-image slab: fold several images into one block.
        tile_hw = hw
        bn = min(n, max(1, target_bytes // slab_bytes))
        bn = _cdiv(n, _cdiv(n, bn))                   # balance the N tail
    if want_two_steps:
        # v7x has 2 TensorCores/chip; 'parallel' grid axes shard across them.
        steps = _cdiv(n, bn) * _cdiv(hw, tile_hw)
        if steps < 2:
            if bn > 1:
                bn = _cdiv(bn, 2)
            elif hw > 128:
                tile_hw = min(tile_hw, _round_up(_cdiv(hw, 2), 128))
    return bn, tile_hw


def _l2norm_kernel(x_ref, w_ref, o_ref):
    # x_ref / o_ref: (BN, C, TILE_HW) block; w_ref: (1, C, 1) channel scale.
    # All reduction / normalization math is done in f32 regardless of input dtype.
    x = x_ref[...].astype(jnp.float32)
    sq_sum = jnp.sum(x * x, axis=1, keepdims=True)                  # (BN, 1, T)
    # eps added to the norm (not the sum of squares), exactly like PyTorch.
    inv_norm = pl.reciprocal(jnp.sqrt(sq_sum) + EPS, approx=False)  # exact parity
    w = w_ref[...].astype(jnp.float32)                              # (1, C, 1)
    o_ref[...] = (x * inv_norm * w).astype(o_ref.dtype)


def l2norm(x_nchw: jax.Array, weight: jax.Array) -> jax.Array:
    """x_nchw: (N, C, H, W), weight: (C,). Returns (N, C, H, W)."""
    N, C, H, W = x_nchw.shape
    HW = H * W

    x3 = x_nchw.reshape(N, C, HW)                     # free reshape of native layout
    w3 = weight.reshape(1, C, 1).astype(x3.dtype)

    cfg = _chip_config()
    bn, tile_hw = _pick_tiles(N, C, HW, x3.dtype.itemsize,
                              cfg["target"], want_two_steps=cfg["two_tc"])
    grid = (_cdiv(N, bn), _cdiv(HW, tile_hw))

    # Double-buffered input + output footprint; raise scoped VMEM only if needed.
    block_bytes = bn * C * tile_hw * x3.dtype.itemsize
    footprint = 4 * block_bytes + (1 << 14)
    vmem_limit = None
    if footprint > cfg["default_scoped"]:
        vmem_limit = min(footprint + (4 << 20), cfg["cap"])

    # NOTE: for very small C (e.g. 4 f32 channels) only half the sublanes of a
    # vreg are used; SSD-typical C=512 is already dense in this layout, so we
    # keep the simple (BN, C, TILE_HW) blocking.
    out3 = pl.pallas_call(
        _l2norm_kernel,
        out_shape=jax.ShapeDtypeStruct((N, C, HW), x3.dtype),
        grid_spec=pltpu.PrefetchScalarGridSpec(
            num_scalar_prefetch=0,
            grid=grid,
            in_specs=[
                pl.BlockSpec((bn, C, tile_hw), lambda i, j: (i, 0, j)),
                pl.BlockSpec((1, C, 1), lambda i, j: (0, 0, 0)),   # replicated weight
            ],
            out_specs=pl.BlockSpec((bn, C, tile_hw), lambda i, j: (i, 0, j)),
        ),
        compiler_params=pltpu.CompilerParams(
            dimension_semantics=("parallel", "parallel"),
            vmem_limit_bytes=vmem_limit,
        ),
    )(x3, w3)

    return out3.reshape(N, C, H, W)


def l2norm_reference(x_nchw: jax.Array, weight: jax.Array) -> jax.Array:
    norm = jnp.sqrt(jnp.sum(x_nchw * x_nchw, axis=1, keepdims=True)) + EPS
    return weight[None, :, None, None] * (x_nchw / norm)


if __name__ == "__main__":
    # Module config (deterministic, in-script): n_channels=4, scale(gamma)=20.0
    n_channels = 4
    gamma = 20.0
    weight = jnp.full((n_channels,), gamma, dtype=jnp.float32)  # init.constant_(w, gamma)

    key = jax.random.PRNGKey(0)
    x = jax.random.normal(key, (2, n_channels, 16, 16), dtype=jnp.float32)  # NCHW

    out = jax.block_until_ready(l2norm(x, weight))

    ref = l2norm_reference(x, weight)
    assert out.shape == x.shape and out.dtype == x.dtype
    assert jnp.allclose(out, ref, atol=1e-5, rtol=1e-5)

    print("KERNEL_OK")
</pallas_src>

<mosaic_0001>
module attributes {stable_mosaic.version = 11 : i64} {
  func.func @_l2norm_kernel(%arg0: i32, %arg1: i32, %arg2: memref<2x4x256xf32, #tpu.memory_space<vmem>>, %arg3: memref<1x4x1xf32, #tpu.memory_space<vmem>>, %arg4: memref<2x4x256xf32, #tpu.memory_space<vmem>>) attributes {dimension_semantics = [#tpu.dimension_semantics<parallel>, #tpu.dimension_semantics<parallel>], iteration_bounds = array<i64: 1, 1>, scalar_prefetch = 0 : i64, scratch_operands = 0 : i64, tpu.core_type = #tpu.core_type<tc>, window_params = [{transform_indices = @transform_0, window_bounds = array<i64: 2, 4, 256>}, {pipeline_mode = #tpu.pipeline_mode<synchronous>, transform_indices = @transform_1, window_bounds = array<i64: 1, 4, 1>}, {transform_indices = @transform_2, window_bounds = array<i64: 2, 4, 256>}]} {
    %c0 = arith.constant 0 : index
    %c0_0 = arith.constant 0 : index
    %c0_1 = arith.constant 0 : index
    %0 = vector.load %arg2[%c0, %c0_0, %c0_1] : memref<2x4x256xf32, #tpu.memory_space<vmem>>, vector<2x4x256xf32>
    %1 = arith.mulf %0, %0 : vector<2x4x256xf32>
    %cst = arith.constant dense<0.000000e+00> : vector<2x256xf32>
    %2 = vector.multi_reduction <add>, %1, %cst [1] : vector<2x4x256xf32> to vector<2x256xf32>
    %3 = vector.shape_cast %2 : vector<2x256xf32> to vector<2x1x256xf32>
    %4 = math.sqrt %3 : vector<2x1x256xf32>
    %cst_2 = arith.constant 1.000000e-10 : f32
    %5 = vector.broadcast %cst_2 : f32 to vector<2x1x256xf32>
    %6 = arith.addf %4, %5 : vector<2x1x256xf32>
    %7 = tpu.reciprocal %6 : vector<2x1x256xf32> -> vector<2x1x256xf32>
    %c0_3 = arith.constant 0 : index
    %c0_4 = arith.constant 0 : index
    %c0_5 = arith.constant 0 : index
    %8 = vector.load %arg3[%c0_3, %c0_4, %c0_5] : memref<1x4x1xf32, #tpu.memory_space<vmem>>, vector<1x4x1xf32>
    %9 = vector.broadcast %7 : vector<2x1x256xf32> to vector<2x4x256xf32>
    %10 = arith.mulf %0, %9 : vector<2x4x256xf32>
    %11 = vector.broadcast %8 : vector<1x4x1xf32> to vector<2x4x256xf32>
    %12 = arith.mulf %10, %11 : vector<2x4x256xf32>
    %c0_6 = arith.constant 0 : index
    %c0_7 = arith.constant 0 : index
    %c0_8 = arith.constant 0 : index
    %13 = vector.load %arg4[%c0_6, %c0_7, %c0_8] : memref<2x4x256xf32, #tpu.memory_space<vmem>>, vector<2x4x256xf32>
    tpu.vector_store %arg4[%c0_6, %c0_7, %c0_8], %12 {strides = array<i32>} : memref<2x4x256xf32, #tpu.memory_space<vmem>>, vector<2x4x256xf32>,
    return
  }
  func.func @transform_0(%arg0: i32, %arg1: i32) -> (i32, i32, i32) {
    %c0_i32 = arith.constant 0 : i32
    %c0_i32_0 = arith.constant 0 : i32
    return %arg0, %c0_i32, %arg1 : i32, i32, i32
  }
  func.func @transform_1(%arg0: i32, %arg1: i32) -> (i32, i32, i32) {
    %c0_i32 = arith.constant 0 : i32
    %c0_i32_0 = arith.constant 0 : i32
    %c0_i32_1 = arith.constant 0 : i32
    %c0_i32_2 = arith.constant 0 : i32
    return %c0_i32, %c0_i32_0, %c0_i32_1 : i32, i32, i32
  }
  func.func @transform_2(%arg0: i32, %arg1: i32) -> (i32, i32, i32) {
    %c0_i32 = arith.constant 0 : i32
    %c0_i32_0 = arith.constant 0 : i32
    return %arg0, %c0_i32, %arg1 : i32, i32, i32
  }
}

</mosaic_0001>

<bundles_post_ra>
// kernel: tpu_custom_call.1
= control target key start
LH: loop header
LB: loop body
LE: loop exit
PB: predicated region body
PF: predicated region fallthrough
CT: control target
= control target key end

     0   :  { %7 = vsyncpa [#allocation3], 0  ;;  %s280_s0 = inlined_call_operand.hbm [shape: f32[2,4,256], index: 0, kind: input, shape index: {}]   ;;  %s281_s1 = inlined_call_operand.vmem [shape: f32[1,4,1], index: 1, kind: input, shape index: {}]   ;;  %s282_s2 = inlined_call_operand.hbm [shape: f32[2,4,256], index: 2, kind: output, shape index: {}]  }
   0x1   :  { %8 = vsyncpa [#allocation4], 0  ;;  %s216_s9 = smov [#allocation2]   ;;  %s168_s13 = scalar_lea.hbm %s280_s0, 256 }
   0x2   :  { %s14_s10 = sshll.u32 %s216_s9, 4  ;;  %p169_p0 = scmp.ne.s32.totalorder %s280_s0, %s168_s13  ;;  %s15_s10 = int_to_ptr.vmem [resolvable:$true] %s14_s10 }
   0x3   :  { %p172_p1 = scmp.lt.u32.totalorder %s168_s13, %s280_s0 }
   0x5   :  { %p174_p2 = pnand %p172_p1, %p169_p0 }
   0x7   :  { %177 = shalt.err (!%p174_p2)
}
   0x8   :  { %s178_s18 = scalar_lea.vmem %s15_s10, 256  ;;  %p183_p4 = scmp.lt.s32.totalorder %s15_s10, %s15_s10 }
   0x9   :  { %p179_p3 = scmp.ne.s32.totalorder %s15_s10, %s178_s18  ;;  %p184_p5 = scmp.lt.s32.totalorder %s178_s18, %s178_s18 }
   0xb   :  { %p185_p6 = por %p184_p5, %p183_p4 }
   0xd   :  { %p186_p7 = pnand %p185_p6, %p179_p3 }
   0xf   :  { %189 = shalt.err (!%p186_p7)
}
  0x10   :  { %s217_s19 = smov 128   ;;  %s218_s20 = smov 8  }
  0x11   :  { %20 = dma.hbm_to_vmem [thread:$0]  %s280_s0, 256, %s15_s10, [#allocation3], %s217_s19, %s217_s19, %s218_s20  }
  0x12   :  { %212 = dma.done.wait [#allocation3], 256  }
  0x13   :  { %213 = vsyncadd [#allocation3], 4294967040  ;;  %v219_v0 = vmov 0   ;;  %v101_v1 = vld [vmem:[%s281_s1] sm:$0xf]  ;;  %v257_v3 = vld [vmem:[#allocation2 + $0x8] sm:$0xff]  ;;  %v119_v63 = vlaneseq }
  0x14   :  { %151 = vset.pattern.permute.xlu0 %v219_v0  ;;  %v255_v2 = vld [vmem:[#allocation2] sm:$0xff]  ;;  %v29_v5 = vmul.f32 %v257_v3, %v257_v3  ;;  %vm36_vm0 = vcmask 1043456   ;;  %v220_v61 = vmov 839922192   ;;  %s221_s0 = smov [#allocation5]  }
  0x15   :  { %114 = vperm.xlu0 %151, %v101_v1   ;;  %v28_v4 = vmul.f32 %v255_v2, %v255_v2  ;;  %v117_v62 = vunpack.c.l.s4 %v220_v61  ;;  %s133_s1 = sshll.u32 %s221_s0, 4  ;;  %s134_s1 = int_to_ptr.vmem [resolvable:$true] %s133_s1 }
  0x16   :  { %v33_v7 = vcombine.high %v29_v5, %v29_v5  ;;  %v51_v9 = vsel %vm36_vm0, %v29_v5, 0.0  ;;  %s190_s25 = scalar_lea.vmem %s134_s1, 256  ;;  %p195_p9 = scmp.lt.s32.totalorder %s134_s1, %s134_s1 }
  0x17   :  { %v32_v6 = vcombine.high %v28_v4, %v28_v4  ;;  %v37_v8 = vsel %vm36_vm0, %v28_v4, 0.0  ;;  %v52_v13 = vrot.slane %v51_v9, 4  ;;  %v118_v5 = vunpack.c.0.s8 %v117_v62  ;;  %p191_p8 = scmp.ne.s32.totalorder %s134_s1, %s190_s25  ;;  %p196_p10 = scmp.lt.s32.totalorder %s190_s25, %s190_s25 }
  0x18   :  { %v38_v11 = vrot.slane %v37_v8, 4  ;;  %v58_v12 = vsel %vm36_vm0, %v33_v7, 0.0 }
  0x19   :  { %v44_v10 = vsel %vm36_vm0, %v32_v6, 0.0  ;;  %v59_v15 = vrot.slane %v58_v12, 4  ;;  %v53_v17 = vadd.f32 %v52_v13, %v51_v9  ;;  %v120_v6 = vshrl.u32 %v119_v63, 7  ;;  %p197_p11 = por %p196_p10, %p195_p9 }
  0x1a   :  { %v45_v14 = vrot.slane %v44_v10, 4  ;;  %v39_v16 = vadd.f32 %v38_v11, %v37_v8 }
  0x1b   :  { %v60_v19 = vadd.f32 %v59_v15, %v58_v12  ;;  %v54_v21 = vrot.slane %v53_v17, 2  ;;  %v121_v9 = vsub.s32 %v118_v5, %v120_v6  ;;  %p198_p12 = pnand %p197_p11, %p191_p8 }
  0x1c   :  { %v46_v18 = vadd.f32 %v45_v14, %v44_v10  ;;  %v40_v20 = vrot.slane %v39_v16, 2 }
  0x1d   :  { %v61_v23 = vrot.slane %v60_v19, 2  ;;  %v55_v25 = vadd.f32 %v54_v21, %v53_v17 }
  0x1e   :  { %v47_v22 = vrot.slane %v46_v18, 2  ;;  %v41_v24 = vadd.f32 %v40_v20, %v39_v16 }
  0x1f   :  { %v62_v27 = vadd.f32 %v61_v23, %v60_v19  ;;  %v56_v29 = vrot.slane %v55_v25, 1 }
  0x20   :  { %v48_v26 = vadd.f32 %v47_v22, %v46_v18  ;;  %v42_v28 = vrot.slane %v41_v24, 1 }
  0x21   :  { %v63_v31 = vrot.slane %v62_v27, 1  ;;  %v57_v33 = vadd.f32 %v56_v29, %v55_v25 }
  0x22   :  { %v49_v30 = vrot.slane %v48_v26, 1  ;;  %v43_v32 = vadd.f32 %v42_v28, %v41_v24 }
  0x23   :  { %v64_v35 = vadd.f32 %v63_v31, %v62_v27  ;;  %vm81_vm2 = vcmp.eq.f32.partialorder %v57_v33, inf  ;;  %v84_v46 = vand.u32 2147483648, %v57_v33  ;;  %vm83_vm6 = vcmp.eq.f32.partialorder %v57_v33, 0.0 }
  0x24   :  { %v50_v34 = vadd.f32 %v49_v30, %v48_v26  ;;  %152 = vrsqrt.f32 %v43_v32  ;;  %vm67_vm1 = vcmp.eq.f32.partialorder %v43_v32, inf  ;;  %v70_v43 = vand.u32 2147483648, %v43_v32 }
  0x25   :  { %154 = vrsqrt.f32 %v57_v33  ;;  %vm69_vm4 = vcmp.eq.f32.partialorder %v43_v32, 0.0  ;;  %vm88_vm5 = vcmp.eq.f32.partialorder %v64_v35, inf  ;;  %v91_v50 = vand.u32 2147483648, %v64_v35 }
  0x26   :  { %156 = vrsqrt.f32 %v50_v34  ;;  %vm74_vm3 = vcmp.eq.f32.partialorder %v50_v34, inf  ;;  %v77_v47 = vand.u32 2147483648, %v50_v34  ;;  %vm76_vm7 = vcmp.eq.f32.partialorder %v50_v34, 0.0 }
  0x27   :  { %158 = vrsqrt.f32 %v64_v35  ;;  %vm90_vm8 = vcmp.eq.f32.partialorder %v64_v35, 0.0 }
  0x2e   :  { %v153_v36 = vpop.eup %152 }
  0x2f   :  { %v155_v37 = vpop.eup %154  ;;  %v66_v40 = vmul.f32 %v153_v36, %v43_v32 }
  0x30   :  { %v157_v38 = vpop.eup %156  ;;  %v80_v41 = vmul.f32 %v155_v37, %v57_v33 }
  0x31   :  { %v159_v39 = vpop.eup %158  ;;  %v73_v42 = vmul.f32 %v157_v38, %v50_v34  ;;  %v68_v45 = vsel %vm67_vm1, %v43_v32, %v66_v40 }
  0x32   :  { %v87_v44 = vmul.f32 %v159_v39, %v64_v35  ;;  %v82_v48 = vsel %vm81_vm2, %v57_v33, %v80_v41  ;;  %v71_v51 = vsel %vm69_vm4, %v70_v43, %v68_v45 }
  0x33   :  { %v75_v49 = vsel %vm74_vm3, %v50_v34, %v73_v42  ;;  %v85_v53 = vsel %vm83_vm6, %v84_v46, %v82_v48  ;;  %v93_v56 = vadd.f32 1e-10, %v71_v51 }
  0x34   :  { %v89_v52 = vsel %vm88_vm5, %v64_v35, %v87_v44  ;;  %v78_v54 = vsel %vm76_vm7, %v77_v47, %v75_v49  ;;  %v95_v57 = vadd.f32 1e-10, %v85_v53 }
  0x35   :  { %v92_v55 = vsel %vm90_vm8, %v91_v50, %v89_v52  ;;  %v94_v58 = vadd.f32 1e-10, %v78_v54  ;;  %160 = vrcp.f32 %v93_v56 }
  0x36   :  { %v96_v59 = vadd.f32 1e-10, %v92_v55  ;;  %162 = vrcp.f32 %v95_v57 }
  0x37   :  { %164 = vrcp.f32 %v94_v58 }
  0x38   :  { %166 = vrcp.f32 %v96_v59 }
  0x3f   :  { %v161_v60 = vpop.eup %160 }
  0x40   :  { %v163_v0 = vpop.eup %162 }
  0x41   :  { %v165_v1 = vpop.eup %164 }
  0x42   :  { %v167_v4 = vpop.eup %166  ;;  %v106_v7 = vcombine.low %v161_v60, %v165_v1 }
  0x43   :  { %v107_v8 = vcombine.low %v163_v0, %v167_v4 }
  0x44   :  { %v110_v10 = vmul.f32 %v106_v7, %v255_v2 }
  0x45   :  { %v111_v11 = vmul.f32 %v107_v8, %v257_v3 }
  0x94   :  { %v115_v12 = vpop.permute.xlu0 %114 }
  0x95   :  { %v122_v13 = vrot.slane %v115_v12, %v121_v9 }
  0x97   :  { %v124_v14 = vmul.f32 %v122_v13, %v110_v10  ;;  %v125_v15 = vmul.f32 %v122_v13, %v111_v11 }
  0x99   :  { %126 = vst [vmem:[#allocation5] sm:$0xff] %v124_v14  ;;  %127 = vst [vmem:[#allocation5 + $0x8] sm:$0xff] %v125_v15 }
  0x9a   :  { %201 = shalt.err (!%p198_p12)
}
  0x9b   :  { %s202_s28 = scalar_lea.hbm %s282_s2, 256 }
  0x9c   :  { %p203_p13 = scmp.ne.s32.totalorder %s282_s2, %s202_s28  ;;  %p206_p0 = scmp.lt.u32.totalorder %s202_s28, %s282_s2 }
  0x9e   :  { %p208_p1 = pnand %p206_p0, %p203_p13 }
  0xa0   :  { %211 = shalt.err (!%p208_p1)
}
  0xa1   :  { %139 = dma.vmem_to_hbm [thread:$0]  %s134_s1, 256, %s282_s2, [#allocation4], %s217_s19, %s217_s19, %s218_s20  }
  0xa2   :  { %214 = dma.done.wait [#allocation4], 256  }
  0xa3   :  { %215 = vsyncadd [#allocation4], 4294967040 }
  0xa4   :  { %143 = vsyncpa [#allocation3], 1 }
  0xa5   :  { %144 = vsyncpa [#allocation4], 1 }

</bundles_post_ra>
